<compile_context>
chip_gen: v7x
topology: tpu7x:2x2x1
jax: 0.10.0
libtpu: 0.0.40
codegen_flags: <defaults>
</compile_context>

<pallas_src>
import jax
import jax.numpy as jnp
from jax.experimental import pallas as pl
from jax.experimental.pallas import tpu as pltpu

LN_EPS = 1e-5  # torch.nn.LayerNorm default eps


def _round_up(x: int, m: int) -> int:
    return ((x + m - 1) // m) * m


def _round_down(x: int, m: int) -> int:
    return (x // m) * m


def _layernorm_f32(x, gamma, beta):
    # x/gamma/beta are float32; biased variance + eps inside rsqrt == torch.
    mu = jnp.mean(x, axis=-1, keepdims=True)
    var = jnp.mean((x - mu) * (x - mu), axis=-1, keepdims=True)
    return (x - mu) * jax.lax.rsqrt(var + LN_EPS) * gamma + beta


def _vmem_budget_bytes() -> int:
    """Generation-aware VMEM budget with headroom for compiler scratch/spill:
    ~48 MiB on v7x (64 MiB physical), ~96 MiB on v5e/v6e (128 MiB physical).
    Falls back to the conservative v7x number if the query is unavailable."""
    phys = 64 << 20
    try:
        phys = int(pltpu.get_tpu_info().vmem_capacity_bytes)
    except Exception:
        pass
    return min(phys * 3 // 4, 96 << 20)


def _batch_dim_semantics():
    """CORE_PARALLEL on multi-TensorCore chips (v7x) so the batch grid axis is
    actually sharded across both cores; plain "parallel" on single-TC chips
    (v5e/v6e), where it is a no-op but always compiles."""
    try:
        kind = jax.devices()[0].device_kind.lower()
        if "v7" in kind or "7x" in kind:
            return (getattr(pltpu, "CORE_PARALLEL", "parallel"),)
    except Exception:
        pass
    return ("parallel",)


def critic_kernel(
    state_ref, action_ref,          # streamed (Bt, F) bf16 activation tiles
    w1_ref, p1_ref,                 # resident: (S,H) bf16, (3,H) f32 = [b1;g1;be1]
    w2s_ref, w2a_ref, p2_ref,       # resident: (H,H) bf16, (A,H) bf16, (3,H) f32
    w3_ref, b3_ref,                 # resident: (H,A) bf16, (1,A) f32
    out_ref,                        # streamed (Bt, A) f32 output tile
):
    # --- state branch: Linear -> LayerNorm -> ReLU (f32 accumulate + f32 LN) ---
    h = jnp.dot(state_ref[...], w1_ref[...],
                preferred_element_type=jnp.float32) + p1_ref[0:1, :]
    h = _layernorm_f32(h, p1_ref[1:2, :], p1_ref[2:3, :])
    h = jnp.maximum(h, 0.0)

    # --- critic trunk: Linear(cat(h, action)) -> LayerNorm -> ReLU ---
    # cat(h, a) @ W2 == h @ W2[:H] + a @ W2[H:]  (split done once in wrapper).
    # h stays f32 (no re-quantization); the resident bf16 weights are upcast in
    # registers -- the MXU has huge slack here, the kernel is HBM/overhead bound.
    h2 = (jnp.dot(h, w2s_ref[...].astype(jnp.float32),
                  preferred_element_type=jnp.float32)
          + jnp.dot(action_ref[...], w2a_ref[...],
                    preferred_element_type=jnp.float32)
          + p2_ref[0:1, :])
    h2 = _layernorm_f32(h2, p2_ref[1:2, :], p2_ref[2:3, :])
    h2 = jnp.maximum(h2, 0.0)

    # --- output head: Linear(hidden -> n_actions) ---
    out_ref[...] = (jnp.dot(h2, w3_ref[...].astype(jnp.float32),
                            preferred_element_type=jnp.float32)
                    + b3_ref[...])


def critic_forward(state, action, params, *, block_batch=16384):
    (w1, b1, g1, be1, w2, b2, g2, be2, w3, b3) = params
    B, n_states = state.shape
    n_actions = action.shape[1]
    hidden = w1.shape[1]

    # bf16 streaming path: halves HBM read traffic on the batch-sized inputs
    # and the (one-time) weight DMAs.  Bias / LayerNorm affine params stay f32
    # since they are combined with the f32 accumulators.
    state_b = state.astype(jnp.bfloat16)
    action_b = action.astype(jnp.bfloat16)
    w1_b = w1.astype(jnp.bfloat16)
    w2_state = w2[:hidden, :].astype(jnp.bfloat16)    # concat split, done once
    w2_action = w2[hidden:, :].astype(jnp.bfloat16)
    w3_b = w3.astype(jnp.bfloat16)
    p1 = jnp.stack([b1, g1, be1], axis=0).astype(jnp.float32)   # (3, hidden)
    p2 = jnp.stack([b2, g2, be2], axis=0).astype(jnp.float32)   # (3, hidden)
    b3r = b3.reshape(1, n_actions).astype(jnp.float32)          # (1, n_actions)

    # --- batch tile: as large as the generation-aware VMEM budget allows ----
    budget = _vmem_budget_bytes()
    resident_bytes = (
        2 * (w1_b.size + w2_state.size + w2_action.size + w3_b.size)   # bf16
        + 4 * (p1.size + p2.size + b3r.size))                          # f32
    per_row_bytes = (
        2 * 2 * (n_states + n_actions)   # double-buffered bf16 input tiles
        + 2 * 4 * n_actions              # double-buffered f32 output tile
        + 4 * 4 * hidden)                # f32 intermediates / temporaries
    bt_cap = max((budget - resident_bytes - (4 << 20)) // per_row_bytes, 8)
    bt = max(8, min(_round_up(block_batch, 8),
                    _round_up(B, 8),
                    _round_down(int(bt_cap), 8)))
    num_tiles = pl.cdiv(B, bt)
    # No host-side jnp.pad: Pallas clips the ragged last block.  Writes outside
    # the (B, n_actions) output are dropped, and garbage tail rows only feed
    # per-row math whose results are never written back.

    # Streamed activation tiles: block index advances with the grid.
    def act_spec(feat):
        return pl.BlockSpec((bt, feat), lambda i: (i, 0))

    # Resident parameters: constant index_map -> DMA'd once; single-buffered,
    # since double-buffering a constant block only doubles its VMEM footprint.
    def resident(arr):
        try:
            return pl.BlockSpec(arr.shape, lambda i: (0, 0),
                                pipeline_mode=pl.Buffered(1))
        except Exception:
            return pl.BlockSpec(arr.shape, lambda i: (0, 0))

    in_specs = [
        act_spec(n_states),        # state
        act_spec(n_actions),       # action
        resident(w1_b),
        resident(p1),
        resident(w2_state),
        resident(w2_action),
        resident(p2),
        resident(w3_b),
        resident(b3r),
    ]
    out_spec = pl.BlockSpec((bt, n_actions), lambda i: (i, 0))
    # NOTE: output stays n_actions lanes wide: unmasking the store via a
    # 128-lane pad would multiply HBM write traffic ~32x, which dominates.
    # NOTE: if hidden were large (>=128) in production, padding hidden (with
    # masked LN statistics) to a multiple of 128/256 would remove lane waste;
    # at these sizes it is not worth the extra masking.

    out = pl.pallas_call(
        critic_kernel,
        out_shape=jax.ShapeDtypeStruct((B, n_actions), jnp.float32),
        grid=(num_tiles,),
        in_specs=in_specs,
        out_specs=out_spec,
        compiler_params=pltpu.CompilerParams(
            dimension_semantics=_batch_dim_semantics(),
            vmem_limit_bytes=int(budget),
        ),
    )(state_b, action_b, w1_b, p1, w2_state, w2_action, p2, w3_b, b3r)

    return out


def init_params(key, n_actions, n_states, hidden):
    ks = jax.random.split(key, 5)
    scale = 0.1
    w1 = scale * jax.random.normal(ks[0], (n_states, hidden), jnp.float32)
    b1 = scale * jax.random.normal(ks[1], (hidden,), jnp.float32)
    g1 = jnp.ones((hidden,), jnp.float32)
    be1 = jnp.zeros((hidden,), jnp.float32)
    w2 = scale * jax.random.normal(ks[2], (hidden + n_actions, hidden), jnp.float32)
    b2 = scale * jax.random.normal(ks[3], (hidden,), jnp.float32)
    g2 = jnp.ones((hidden,), jnp.float32)
    be2 = jnp.zeros((hidden,), jnp.float32)
    w3 = scale * jax.random.normal(ks[4], (hidden, n_actions), jnp.float32)
    b3 = jnp.zeros((n_actions,), jnp.float32)
    return (w1, b1, g1, be1, w2, b2, g2, be2, w3, b3)


def critic_reference(state, action, params):
    """Pure-JAX f32 reference mirroring the PyTorch module."""
    (w1, b1, g1, be1, w2, b2, g2, be2, w3, b3) = params
    h = state @ w1 + b1
    mu = h.mean(-1, keepdims=True)
    var = ((h - mu) ** 2).mean(-1, keepdims=True)
    h = (h - mu) / jnp.sqrt(var + LN_EPS) * g1 + be1
    h = jnp.maximum(h, 0.0)
    sa = jnp.concatenate([h, action], axis=-1)
    h2 = sa @ w2 + b2
    mu = h2.mean(-1, keepdims=True)
    var = ((h2 - mu) ** 2).mean(-1, keepdims=True)
    h2 = (h2 - mu) / jnp.sqrt(var + LN_EPS) * g2 + be2
    h2 = jnp.maximum(h2, 0.0)
    return h2 @ w3 + b3


if __name__ == "__main__":
    n_actions, n_states, hidden = 4, 16, 32
    batch = 20  # not a multiple of 8 -> exercises the clipped last block

    key = jax.random.PRNGKey(0)
    k_s, k_a, k_p = jax.random.split(key, 3)
    state = jax.random.normal(k_s, (batch, n_states), jnp.float32)
    action = jax.random.normal(k_a, (batch, n_actions), jnp.float32)
    params = init_params(k_p, n_actions, n_states, hidden)

    # Reference sees the same bf16-quantized values the kernel streams, so the
    # comparison checks the kernel math (f32 accumulation / LN), not bf16 noise.
    def q(x):
        return x.astype(jnp.bfloat16).astype(jnp.float32)

    params_q = (q(params[0]), params[1], params[2], params[3],
                q(params[4]), params[5], params[6], params[7],
                q(params[8]), params[9])
    ref = critic_reference(q(state), q(action), params_q)

    # Small tile -> multi-step grid with a ragged tail block (grid=(3,)).
    out_small = jax.block_until_ready(
        critic_forward(state, action, params, block_batch=8))
    # Default tile -> single clipped block (grid=(1,)).
    out_big = jax.block_until_ready(critic_forward(state, action, params))

    for out in (out_small, out_big):
        assert out.shape == (batch, n_actions)
        assert jnp.allclose(out, ref, atol=2e-3, rtol=2e-3), "mismatch vs reference"

    print("KERNEL_OK")
</pallas_src>

<mosaic_0001>
module attributes {stable_mosaic.version = 11 : i64} {
  func.func @critic_kernel(%arg0: i32, %arg1: memref<8x16xbf16, #tpu.memory_space<vmem>>, %arg2: memref<8x4xbf16, #tpu.memory_space<vmem>>, %arg3: memref<16x32xbf16, #tpu.memory_space<vmem>>, %arg4: memref<3x32xf32, #tpu.memory_space<vmem>>, %arg5: memref<32x32xbf16, #tpu.memory_space<vmem>>, %arg6: memref<4x32xbf16, #tpu.memory_space<vmem>>, %arg7: memref<3x32xf32, #tpu.memory_space<vmem>>, %arg8: memref<32x4xbf16, #tpu.memory_space<vmem>>, %arg9: memref<1x4xf32, #tpu.memory_space<vmem>>, %arg10: memref<8x4xf32, #tpu.memory_space<vmem>>) attributes {dimension_semantics = [#tpu.dimension_semantics<parallel>], iteration_bounds = array<i64: 3>, scalar_prefetch = 0 : i64, scratch_operands = 0 : i64, tpu.core_type = #tpu.core_type<tc>, window_params = [{transform_indices = @transform_0, window_bounds = array<i64: 8, 16>}, {transform_indices = @transform_1, window_bounds = array<i64: 8, 4>}, {pipeline_mode = #tpu.pipeline_mode<synchronous>, transform_indices = @transform_2, window_bounds = array<i64: 16, 32>}, {pipeline_mode = #tpu.pipeline_mode<synchronous>, transform_indices = @transform_3, window_bounds = array<i64: 3, 32>}, {pipeline_mode = #tpu.pipeline_mode<synchronous>, transform_indices = @transform_4, window_bounds = array<i64: 32, 32>}, {pipeline_mode = #tpu.pipeline_mode<synchronous>, transform_indices = @transform_5, window_bounds = array<i64: 4, 32>}, {pipeline_mode = #tpu.pipeline_mode<synchronous>, transform_indices = @transform_6, window_bounds = array<i64: 3, 32>}, {pipeline_mode = #tpu.pipeline_mode<synchronous>, transform_indices = @transform_7, window_bounds = array<i64: 32, 4>}, {pipeline_mode = #tpu.pipeline_mode<synchronous>, transform_indices = @transform_8, window_bounds = array<i64: 1, 4>}, {transform_indices = @transform_9, window_bounds = array<i64: 8, 4>}]} {
    %c0 = arith.constant 0 : index
    %c0_0 = arith.constant 0 : index
    %0 = vector.load %arg1[%c0, %c0_0] : memref<8x16xbf16, #tpu.memory_space<vmem>>, vector<8x16xbf16>
    %c0_1 = arith.constant 0 : index
    %c0_2 = arith.constant 0 : index
    %1 = vector.load %arg3[%c0_1, %c0_2] : memref<16x32xbf16, #tpu.memory_space<vmem>>, vector<16x32xbf16>
    %cst = arith.constant dense<0.000000e+00> : vector<8x32xf32>
    %2 = tpu.matmul %0, %1, %cst {dimension_numbers = #tpu.dot_dimension_numbers<[1], [0], [0], [1], [0, 0, 1, 1], [], []>} : vector<8x16xbf16>, vector<16x32xbf16>, vector<8x32xf32> -> vector<8x32xf32>
    %c0_3 = arith.constant 0 : index
    %c0_4 = arith.constant 0 : index
    %3 = vector.load %arg4[%c0_3, %c0_4] : memref<3x32xf32, #tpu.memory_space<vmem>>, vector<1x32xf32>
    %4 = vector.broadcast %3 : vector<1x32xf32> to vector<8x32xf32>
    %5 = arith.addf %2, %4 : vector<8x32xf32>
    %c1 = arith.constant 1 : index
    %c0_5 = arith.constant 0 : index
    %6 = vector.load %arg4[%c1, %c0_5] : memref<3x32xf32, #tpu.memory_space<vmem>>, vector<1x32xf32>
    %c2 = arith.constant 2 : index
    %c0_6 = arith.constant 0 : index
    %7 = vector.load %arg4[%c2, %c0_6] : memref<3x32xf32, #tpu.memory_space<vmem>>, vector<1x32xf32>
    %cst_7 = arith.constant dense<0.000000e+00> : vector<8xf32>
    %8 = vector.multi_reduction <add>, %5, %cst_7 [1] : vector<8x32xf32> to vector<8xf32>
    %9 = vector.shape_cast %8 : vector<8xf32> to vector<8x1xf32>
    %cst_8 = arith.constant 3.200000e+01 : f32
    %10 = vector.broadcast %cst_8 : f32 to vector<8x1xf32>
    %11 = arith.divf %9, %10 : vector<8x1xf32>
    %12 = vector.broadcast %11 : vector<8x1xf32> to vector<8x32xf32>
    %13 = arith.subf %5, %12 : vector<8x32xf32>
    %14 = vector.broadcast %11 : vector<8x1xf32> to vector<8x32xf32>
    %15 = arith.subf %5, %14 : vector<8x32xf32>
    %16 = arith.mulf %13, %15 : vector<8x32xf32>
    %cst_9 = arith.constant dense<0.000000e+00> : vector<8xf32>
    %17 = vector.multi_reduction <add>, %16, %cst_9 [1] : vector<8x32xf32> to vector<8xf32>
    %18 = vector.shape_cast %17 : vector<8xf32> to vector<8x1xf32>
    %cst_10 = arith.constant 3.200000e+01 : f32
    %19 = vector.broadcast %cst_10 : f32 to vector<8x1xf32>
    %20 = arith.divf %18, %19 : vector<8x1xf32>
    %21 = vector.broadcast %11 : vector<8x1xf32> to vector<8x32xf32>
    %22 = arith.subf %5, %21 : vector<8x32xf32>
    %cst_11 = arith.constant 9.99999974E-6 : f32
    %23 = vector.broadcast %cst_11 : f32 to vector<8x1xf32>
    %24 = arith.addf %20, %23 : vector<8x1xf32>
    %25 = math.rsqrt %24 : vector<8x1xf32>
    %26 = vector.broadcast %25 : vector<8x1xf32> to vector<8x32xf32>
    %27 = arith.mulf %22, %26 : vector<8x32xf32>
    %28 = vector.broadcast %6 : vector<1x32xf32> to vector<8x32xf32>
    %29 = arith.mulf %27, %28 : vector<8x32xf32>
    %30 = vector.broadcast %7 : vector<1x32xf32> to vector<8x32xf32>
    %31 = arith.addf %29, %30 : vector<8x32xf32>
    %cst_12 = arith.constant 0.000000e+00 : f32
    %32 = vector.broadcast %cst_12 : f32 to vector<8x32xf32>
    %33 = arith.maximumf %31, %32 : vector<8x32xf32>
    %c0_13 = arith.constant 0 : index
    %c0_14 = arith.constant 0 : index
    %34 = vector.load %arg5[%c0_13, %c0_14] : memref<32x32xbf16, #tpu.memory_space<vmem>>, vector<32x32xbf16>
    %35 = arith.extf %34 : vector<32x32xbf16> to vector<32x32xf32>
    %cst_15 = arith.constant dense<0.000000e+00> : vector<8x32xf32>
    %36 = tpu.matmul %33, %35, %cst_15 {dimension_numbers = #tpu.dot_dimension_numbers<[1], [0], [0], [1], [0, 0, 1, 1], [], []>} : vector<8x32xf32>, vector<32x32xf32>, vector<8x32xf32> -> vector<8x32xf32>
    %c0_16 = arith.constant 0 : index
    %c0_17 = arith.constant 0 : index
    %37 = vector.load %arg2[%c0_16, %c0_17] : memref<8x4xbf16, #tpu.memory_space<vmem>>, vector<8x4xbf16>
    %c0_18 = arith.constant 0 : index
    %c0_19 = arith.constant 0 : index
    %38 = vector.load %arg6[%c0_18, %c0_19] : memref<4x32xbf16, #tpu.memory_space<vmem>>, vector<4x32xbf16>
    %cst_20 = arith.constant dense<0.000000e+00> : vector<8x32xf32>
    %39 = tpu.matmul %37, %38, %cst_20 {dimension_numbers = #tpu.dot_dimension_numbers<[1], [0], [0], [1], [0, 0, 1, 1], [], []>} : vector<8x4xbf16>, vector<4x32xbf16>, vector<8x32xf32> -> vector<8x32xf32>
    %40 = arith.addf %36, %39 : vector<8x32xf32>
    %c0_21 = arith.constant 0 : index
    %c0_22 = arith.constant 0 : index
    %41 = vector.load %arg7[%c0_21, %c0_22] : memref<3x32xf32, #tpu.memory_space<vmem>>, vector<1x32xf32>
    %42 = vector.broadcast %41 : vector<1x32xf32> to vector<8x32xf32>
    %43 = arith.addf %40, %42 : vector<8x32xf32>
    %c1_23 = arith.constant 1 : index
    %c0_24 = arith.constant 0 : index
    %44 = vector.load %arg7[%c1_23, %c0_24] : memref<3x32xf32, #tpu.memory_space<vmem>>, vector<1x32xf32>
    %c2_25 = arith.constant 2 : index
    %c0_26 = arith.constant 0 : index
    %45 = vector.load %arg7[%c2_25, %c0_26] : memref<3x32xf32, #tpu.memory_space<vmem>>, vector<1x32xf32>
    %cst_27 = arith.constant dense<0.000000e+00> : vector<8xf32>
    %46 = vector.multi_reduction <add>, %43, %cst_27 [1] : vector<8x32xf32> to vector<8xf32>
    %47 = vector.shape_cast %46 : vector<8xf32> to vector<8x1xf32>
    %cst_28 = arith.constant 3.200000e+01 : f32
    %48 = vector.broadcast %cst_28 : f32 to vector<8x1xf32>
    %49 = arith.divf %47, %48 : vector<8x1xf32>
    %50 = vector.broadcast %49 : vector<8x1xf32> to vector<8x32xf32>
    %51 = arith.subf %43, %50 : vector<8x32xf32>
    %52 = vector.broadcast %49 : vector<8x1xf32> to vector<8x32xf32>
    %53 = arith.subf %43, %52 : vector<8x32xf32>
    %54 = arith.mulf %51, %53 : vector<8x32xf32>
    %cst_29 = arith.constant dense<0.000000e+00> : vector<8xf32>
    %55 = vector.multi_reduction <add>, %54, %cst_29 [1] : vector<8x32xf32> to vector<8xf32>
    %56 = vector.shape_cast %55 : vector<8xf32> to vector<8x1xf32>
    %cst_30 = arith.constant 3.200000e+01 : f32
    %57 = vector.broadcast %cst_30 : f32 to vector<8x1xf32>
    %58 = arith.divf %56, %57 : vector<8x1xf32>
    %59 = vector.broadcast %49 : vector<8x1xf32> to vector<8x32xf32>
    %60 = arith.subf %43, %59 : vector<8x32xf32>
    %cst_31 = arith.constant 9.99999974E-6 : f32
    %61 = vector.broadcast %cst_31 : f32 to vector<8x1xf32>
    %62 = arith.addf %58, %61 : vector<8x1xf32>
    %63 = math.rsqrt %62 : vector<8x1xf32>
    %64 = vector.broadcast %63 : vector<8x1xf32> to vector<8x32xf32>
    %65 = arith.mulf %60, %64 : vector<8x32xf32>
    %66 = vector.broadcast %44 : vector<1x32xf32> to vector<8x32xf32>
    %67 = arith.mulf %65, %66 : vector<8x32xf32>
    %68 = vector.broadcast %45 : vector<1x32xf32> to vector<8x32xf32>
    %69 = arith.addf %67, %68 : vector<8x32xf32>
    %cst_32 = arith.constant 0.000000e+00 : f32
    %70 = vector.broadcast %cst_32 : f32 to vector<8x32xf32>
    %71 = arith.maximumf %69, %70 : vector<8x32xf32>
    %c0_33 = arith.constant 0 : index
    %c0_34 = arith.constant 0 : index
    %72 = vector.load %arg8[%c0_33, %c0_34] : memref<32x4xbf16, #tpu.memory_space<vmem>>, vector<32x4xbf16>
    %73 = arith.extf %72 : vector<32x4xbf16> to vector<32x4xf32>
    %cst_35 = arith.constant dense<0.000000e+00> : vector<8x4xf32>
    %74 = tpu.matmul %71, %73, %cst_35 {dimension_numbers = #tpu.dot_dimension_numbers<[1], [0], [0], [1], [0, 0, 1, 1], [], []>} : vector<8x32xf32>, vector<32x4xf32>, vector<8x4xf32> -> vector<8x4xf32>
    %c0_36 = arith.constant 0 : index
    %c0_37 = arith.constant 0 : index
    %75 = vector.load %arg9[%c0_36, %c0_37] : memref<1x4xf32, #tpu.memory_space<vmem>>, vector<1x4xf32>
    %76 = vector.broadcast %75 : vector<1x4xf32> to vector<8x4xf32>
    %77 = arith.addf %74, %76 : vector<8x4xf32>
    %c0_38 = arith.constant 0 : index
    %c0_39 = arith.constant 0 : index
    %78 = vector.load %arg10[%c0_38, %c0_39] : memref<8x4xf32, #tpu.memory_space<vmem>>, vector<8x4xf32>
    tpu.vector_store %arg10[%c0_38, %c0_39], %77 {strides = array<i32>} : memref<8x4xf32, #tpu.memory_space<vmem>>, vector<8x4xf32>,
    return
  }
  func.func @transform_0(%arg0: i32) -> (i32, i32) {
    %c0_i32 = arith.constant 0 : i32
    %c0_i32_0 = arith.constant 0 : i32
    return %arg0, %c0_i32 : i32, i32
  }
  func.func @transform_1(%arg0: i32) -> (i32, i32) {
    %c0_i32 = arith.constant 0 : i32
    %c0_i32_0 = arith.constant 0 : i32
    return %arg0, %c0_i32 : i32, i32
  }
  func.func @transform_2(%arg0: i32) -> (i32, i32) {
    %c0_i32 = arith.constant 0 : i32
    %c0_i32_0 = arith.constant 0 : i32
    %c0_i32_1 = arith.constant 0 : i32
    return %c0_i32, %c0_i32_0 : i32, i32
  }
  func.func @transform_3(%arg0: i32) -> (i32, i32) {
    %c0_i32 = arith.constant 0 : i32
    %c0_i32_0 = arith.constant 0 : i32
    %c0_i32_1 = arith.constant 0 : i32
    return %c0_i32, %c0_i32_0 : i32, i32
  }
  func.func @transform_4(%arg0: i32) -> (i32, i32) {
    %c0_i32 = arith.constant 0 : i32
    %c0_i32_0 = arith.constant 0 : i32
    %c0_i32_1 = arith.constant 0 : i32
    return %c0_i32, %c0_i32_0 : i32, i32
  }
  func.func @transform_5(%arg0: i32) -> (i32, i32) {
    %c0_i32 = arith.constant 0 : i32
    %c0_i32_0 = arith.constant 0 : i32
    %c0_i32_1 = arith.constant 0 : i32
    return %c0_i32, %c0_i32_0 : i32, i32
  }
  func.func @transform_6(%arg0: i32) -> (i32, i32) {
    %c0_i32 = arith.constant 0 : i32
    %c0_i32_0 = arith.constant 0 : i32
    %c0_i32_1 = arith.constant 0 : i32
    return %c0_i32, %c0_i32_0 : i32, i32
  }
  func.func @transform_7(%arg0: i32) -> (i32, i32) {
    %c0_i32 = arith.constant 0 : i32
    %c0_i32_0 = arith.constant 0 : i32
    %c0_i32_1 = arith.constant 0 : i32
    return %c0_i32, %c0_i32_0 : i32, i32
  }
  func.func @transform_8(%arg0: i32) -> (i32, i32) {
    %c0_i32 = arith.constant 0 : i32
    %c0_i32_0 = arith.constant 0 : i32
    %c0_i32_1 = arith.constant 0 : i32
    return %c0_i32, %c0_i32_0 : i32, i32
  }
  func.func @transform_9(%arg0: i32) -> (i32, i32) {
    %c0_i32 = arith.constant 0 : i32
    %c0_i32_0 = arith.constant 0 : i32
    return %arg0, %c0_i32 : i32, i32
  }
}

</mosaic_0001>

<bundles_post_ra>
// kernel: tpu_custom_call.1
= control target key start
LH: loop header
LB: loop body
LE: loop exit
PB: predicated region body
PF: predicated region fallthrough
CT: control target
= control target key end

     0   :  { %s926_s30 = smov 0   ;;  %s1005_s0 = inlined_call_operand.vmem [shape: bf16[20,16], index: 0, kind: input, shape index: {}]   ;;  %s1006_s1 = inlined_call_operand.vmem [shape: bf16[20,4], index: 1, kind: input, shape index: {}]   ;;  %s1007_s2 = inlined_call_operand.vmem [shape: bf16[16,32], index: 2, kind: input, shape index: {}]   ;;  %s1008_s3 = inlined_call_operand.vmem [shape: f32[3,32], index: 3, kind: input, shape index: {}]   ;;  %s1009_s4 = inlined_call_operand.vmem [shape: bf16[32,32], index: 4, kind: input, shape index: {}]   ;;  %s1010_s5 = inlined_call_operand.vmem [shape: bf16[4,32], index: 5, kind: input, shape index: {}]   ;;  %s1011_s6 = inlined_call_operand.vmem [shape: f32[3,32], index: 6, kind: input, shape index: {}]   ;;  %s1012_s7 = inlined_call_operand.vmem [shape: bf16[32,4], index: 7, kind: input, shape index: {}]   ;;  %s1013_s8 = inlined_call_operand.vmem [shape: f32[1,4], index: 8, kind: input, shape index: {}]   ;;  %s1014_s9 = inlined_call_operand.vmem [shape: f32[20,4], index: 9, kind: output, shape index: {}]  }
   0x1 LB: > { %s749_s10 = sadd.s32 4294967295, %s871_s30   ;;  %p753_p0 = scmp.ge.s32.totalorder %s871_s30, 1  ;;  %s871_s30 = sphi %s926_s30, %s19_s30  }
   0x2   : > { %p295_p1 = scmp.lt.s32.totalorder %s871_s30, 4 }
   0x4   : > { %p296_p2 = pnand %p753_p0, %p295_p1 }
   0x5   : > { %v860_v0 = vld [vmem:[%s1007_s2] sm:$0xff] (!%p296_p2)   ;;  %v873_v1 = vmov (!%p296_p2), 0.0   ;;  %p333_p3 = scmp.lt.s32.totalorder (!%p296_p2), %s749_s10, 2  ;;  %vm874_vm0 = vmmov (!%p296_p2), 0   ;;  %vm360_vm1 = vcmask (!%p296_p2), 130048   ;;  %vm406_vm2 = vcmask (!%p296_p2), 261120  }
   0x6   : > { %299 = sbr.rel (%p296_p2) target bundleno = 1292 (0x50c), region = 56  ;;  %803 = vmatprep.subr.bf16.mxu0 (!%p296_p2), %v873_v1  ;;  %809 = vmatprep.subr.bf16.mxu1 (!%p296_p2), %v873_v1  ;;  %v757_v3 = vld [vmem:[%s1008_s3] ss:$0 sm:$0xff] (!%p296_p2)  ;;  %v875_v15 = vmov (!%p296_p2), 0.0|0.0   ;;  %vm446_vm3 = vcmask (!%p296_p2), 1041408   ;;  %v787_v19 = vld [vmem:[%s1009_s4 + $0x8] sm:$0xff] (!%p296_p2)  }
   0x7   : > { %804 = vmatpush3.bf16.msra.mxu0 (!%p296_p2), %v860_v0  ;;  %805 = vmatprep.mubr.msk.bf16.mxu0 (!%p296_p2), %vm874_vm0, %v873_v1  ;;  %v772_v16 = vld [vmem:[%s1009_s4] sm:$0xff] (!%p296_p2)   ;;  %vm442_vm4 = vcmask (!%p296_p2), 31744   ;;  %v788_v47 = vld [vmem:[%s1012_s7 + $0x8] sm:$0xff] (!%p296_p2)  }
   0x8   : > { %811 = vmatprep.mubr.msk.bf16.mxu1 (!%p296_p2), %vm874_vm0, %v873_v1  ;;  %837 = vmatprep.subr.bf16.mxu0 (!%p296_p2), %v875_v15  ;;  %v441_v17 = vld [vmem:[%s1010_s5] sm:$0x3] (!%p296_p2)  ;;  %v761_v27 = vld [vmem:[%s1008_s3 + $0x2] ss:$0 sm:$0xff] (!%p296_p2) }
   0x9   : > { %v448_v18 = vsel (!%p296_p2), %vm446_vm3, %v441_v17, 0  ;;  %v760_v25 = vld [vmem:[%s1008_s3 + $0x1] ss:$0 sm:$0xff] (!%p296_p2)  ;;  %v764_v36 = vld [vmem:[%s1011_s6] ss:$0 sm:$0xff] (!%p296_p2) }
   0xa   : > { %810 = vmatpush3.bf16.msra.mxu1 (!%p296_p2), %v448_v18  ;;  %v780_v46 = vld [vmem:[%s1012_s7] sm:$0xff] (!%p296_p2)  }
   0xb   : > { %843 = vmatprep.subr.bf16.mxu1 (!%p296_p2), %v875_v15  ;;  %v765_v52 = vld [vmem:[%s1011_s6 + $0x1] ss:$0 sm:$0xff] (!%p296_p2)  ;;  %v766_v54 = vld [vmem:[%s1011_s6 + $0x2] ss:$0 sm:$0xff] (!%p296_p2)  ;;  %v767_v58 = vld [vmem:[%s1013_s8] ss:$0 sm:$0xff] (!%p296_p2) }
   0xd   : > { %s1016_s10 = smov (!%p333_p3, %s749_s10), 2 }
   0xe   : > { %s754_s13 = sshll.u32 %s1016_s10, 2  ;;  %s756_s23 = sshll.u32 %s1016_s10, 3 }
   0xf   : > { %s336_s16 = scalar_lea.vmem %s1005_s0, %s754_s13  ;;  %s340_s27 = scalar_lea.vmem %s1006_s1, %s754_s13 }
  0x10   : > { %v346_v2 = vld [vmem:[%s336_s16] sm:$0xf]  ;;  %s344_s28 = scalar_lea.vmem %s1014_s9, %s756_s23 }
  0x11   : > { %806 = vmatmul.mubr.msk.bf16.vlgmr.msra.gmra.mrb[0].mxu0 %vm360_vm1, %v346_v2  ;;  %v440_v20 = vld [vmem:[%s340_s27] sm:$0xf] }
  0x12   : > { %823 = vmatprep.mubr.msk.f32.mxu0 %vm874_vm0, %v873_v1  ;;  %839 = vmatpush3.bf16.msra.mxu0 %v772_v16 }
  0x13   : > { %840 = vmatprep.subr.bf16.mxu0 %v875_v15  ;;  %812 = vmatmul.mubr.msk.bf16.vlgmr.msra.gmra.mrb[0].mxu1 %vm442_vm4, %v440_v20 }
  0x14   : > { %834 = vmatprep.mubr.msk.f32.mxu1 %vm874_vm0, %v873_v1  ;;  %845 = vmatpush3.bf16.msra.mxu1 %v780_v46 }
  0x15   : > { %846 = vmatprep.subr.bf16.mxu1 %v875_v15 }
  0x16   : > { %842 = vmatpush3.bf16.msra.mxu0 %v787_v19 }
  0x18   : > { %848 = vmatpush3.bf16.msra.mxu1 %v788_v47 }
  0xe4   : > { %v398_v4 = vpop.f32.mrb[0].mxu0 }
  0xe5   : > { %v399_v5 = vadd.f32 %v757_v3, %v398_v4  ;;  %v807_v6 = vpop.f32.mrb[1].mxu0 }
  0xe6   : > { %v401_v7 = vpop.f32.mrb[2].mxu0  ;;  %v484_v31 = vpop.f32.mrb[0].mxu1 }
  0xe7   : > { %v808_v8 = vpop.f32.mrb[3].mxu0  ;;  %v407_v9 = vsel %vm406_vm2, %v399_v5, 0.0  ;;  %v813_v32 = vpop.f32.mrb[1].mxu1 }
  0xe8   : > { %408 = vadd.xlane.f32.xlu0 %v407_v9  ;;  %v487_v33 = vpop.f32.mrb[2].mxu1 }
  0xe9   : > { %v814_v34 = vpop.f32.mrb[3].mxu1 }
 0x175   : > { %v409_v10 = vpop.xlane.xlu0 %408 }
 0x176   : > { %v411_v11 = vmul.f32 0.03125, %v409_v10 }
 0x178   : > { %v412_v12 = vsub.f32 %v399_v5, %v411_v11 }
 0x17a   : > { %v413_v13 = vmul.f32 %v412_v12, %v412_v12 }
 0x17c   : > { %v414_v14 = vsel %vm406_vm2, %v413_v13, 0.0 }
 0x17d   : > { %415 = vadd.xlane.f32.xlu0 %v414_v14 }
 0x20a   : > { %v416_v21 = vpop.xlane.xlu0 %415 }
 0x20b   : > { %v417_v22 = vmul.f32 0.03125, %v416_v21 }
 0x20d   : > { %v418_v23 = vadd.f32 1e-05, %v417_v22 }
 0x20f   : > { %861 = vrsqrt.f32 %v418_v23 }
 0x219   : > { %v862_v24 = vpop.eup %861 }
 0x21a   : > { %v420_v26 = vmul.f32 %v862_v24, %v412_v12 }
 0x21c   : > { %v425_v28 = vmul.f32 %v760_v25, %v420_v26 }
 0x21e   : > { %v430_v29 = vadd.f32 %v761_v27, %v425_v28 }
 0x220   : > { %v431_v30 = vmax.f32 %v430_v29, 0.0 }
 0x222   : > { %824 = vmatmul.mubr.msk.f32.vlgmr.msra.gmra.mrb[4].mxu0 %vm406_vm2, %v431_v30 }
 0x2f5   : > { %v559_v35 = vpop.f32.mrb[4].mxu0 }
 0x2f6   : > { %v560_v37 = vadd.f32 %v559_v35, %v484_v31  ;;  %v825_v38 = vpop.f32.mrb[5].mxu0 }
 0x2f8   : > { %v568_v39 = vadd.f32 %v764_v36, %v560_v37 }
 0x2fa   : > { %v571_v40 = vsel %vm406_vm2, %v568_v39, 0.0 }
 0x2fb   : > { %572 = vadd.xlane.f32.xlu1 %v571_v40 }
 0x388   : > { %v573_v41 = vpop.xlane.xlu1 %572 }
 0x389   : > { %v574_v42 = vmul.f32 0.03125, %v573_v41 }
 0x38b   : > { %v575_v43 = vsub.f32 %v568_v39, %v574_v42 }
 0x38d   : > { %v576_v44 = vmul.f32 %v575_v43, %v575_v43 }
 0x38f   : > { %v577_v45 = vsel %vm406_vm2, %v576_v44, 0.0 }
 0x390   : > { %578 = vadd.xlane.f32.xlu1 %v577_v45 }
 0x41d   : > { %v579_v48 = vpop.xlane.xlu1 %578 }
 0x41e   : > { %v580_v49 = vmul.f32 0.03125, %v579_v48 }
 0x420   : > { %v581_v50 = vadd.f32 1e-05, %v580_v49 }
 0x422   : > { %863 = vrsqrt.f32 %v581_v50 }
 0x42c   : > { %v864_v51 = vpop.eup %863 }
 0x42d   : > { %v583_v53 = vmul.f32 %v864_v51, %v575_v43 }
 0x42f   : > { %v588_v55 = vmul.f32 %v765_v52, %v583_v53 }
 0x431   : > { %v593_v56 = vadd.f32 %v766_v54, %v588_v55 }
 0x433   : > { %v594_v57 = vmax.f32 %v593_v56, 0.0 }
 0x435   : > { %835 = vmatmul.mubr.msk.f32.vlgmr.msra.gmra.mrb[4].mxu1 %vm406_vm2, %v594_v57 }
 0x508   : > { %v679_v59 = vpop.f32.mrb[4].mxu1 }
 0x509   : > { %v680_v60 = vadd.f32 %v767_v58, %v679_v59  ;;  %v836_v61 = vpop.f32.mrb[5].mxu1 }
 0x50b   : > { %683 = vst.msk [vmem:[%s344_s28] sm:$0xff] %vm442_vm4, %v680_v60 }
 0x50c PF: > { %s19_s30 = sadd.s32 1, %s871_s30  }
 0x50d   : > { %p16_p4 = scmp.ge.s32.totalorder %s19_s30, 5  }
 0x50f   :  { %18 = sbr.rel (!%p16_p4) target bundleno = 1 (0x1), region = 89 }

</bundles_post_ra>
